<compile_context>
chip_gen: v5e
topology: v5e:2x2
jax: 0.10.0
libtpu: 0.0.40
codegen_flags: <defaults>
</compile_context>

<pallas_src>
import jax
import jax.numpy as jnp
from jax.experimental import pallas as pl
from jax.experimental.pallas import tpu as pltpu


def _round_up(n, m):
    return ((n + m - 1) // m) * m


def _pick_tile(B, block_b, *, min_steps=2):
    """Pick a sublane-aligned batch tile; prefer one that divides B exactly."""
    align = 8 if B < 16 else 16
    # Cap so the grid has >= min_steps steps when B is large enough
    # (keeps both v7x TensorCores busy via the "parallel" batch axis).
    cap = max(align, _round_up(-(-B // min_steps), align))
    tb_max = max(align, min(_round_up(block_b, align), cap))
    tb = tb_max
    while tb >= align:
        if B % tb == 0:
            return tb          # divides B -> no padding copy needed
        tb -= align
    return tb_max              # fall back: pad the tail


def learner_kernel(x_ref, w1_ref, b1_ref, w23_ref, b23_ref, o_ref):
    # Layer 1: Linear + ReLU (eval-mode dropout = identity).
    # Cast x to bf16 in-kernel (VPU) so the dot takes the native bf16 MXU path;
    # accumulation stays f32.
    x_bf = x_ref[...].astype(jnp.bfloat16)
    h1 = jnp.dot(x_bf, w1_ref[...], preferred_element_type=jnp.float32)
    h1 = jnp.maximum(h1 + b1_ref[...], 0.0)
    # Fused layers 2+3 (no nonlinearity between them in forward()):
    # N=1 projection done as VPU multiply + XLU lane reduce (f32), not MXU.
    z = jnp.sum(h1 * w23_ref[...], axis=-1, keepdims=True)
    o_ref[...] = jax.nn.sigmoid(z + b23_ref[0])


def learner_forward(x, w1, b1, w2, b2, w3, b3, *, block_b=512):
    """x: (B, D) float32. Weights in PyTorch convention: w_i is (out, in)."""
    B, D = x.shape
    H1 = w1.shape[0]  # 512

    # --- wrapper-side parameter prep (glue, not kernel work) ----------------
    w1t = w1.T.astype(jnp.bfloat16)                       # (D, H1) bf16
    b1r = b1.reshape(1, H1).astype(jnp.float32)           # (1, H1)
    # Algebraic fusion of layers 2 and 3 (valid: no nonlinearity between them
    # in forward(); eval-mode dropout is identity). Lane-dense (1, H1) row.
    w23 = (w3 @ w2).astype(jnp.float32)                   # (1, H1)
    b23 = (b2 @ w3.T + b3).astype(jnp.float32).reshape(1)  # (1,) scalar

    # --- batch tiling --------------------------------------------------------
    TB = _pick_tile(B, block_b)
    Bp = _round_up(B, TB)
    if Bp != B:
        # Only reached when no aligned tile divides B; pads just the tail rows.
        x = jnp.pad(x, ((0, Bp - B), (0, 0)))

    out = pl.pallas_call(
        learner_kernel,
        out_shape=jax.ShapeDtypeStruct((Bp, 1), jnp.float32),
        grid=(Bp // TB,),
        in_specs=[
            pl.BlockSpec((TB, D), lambda i: (i, 0)),            # x: tiled over batch (f32)
            pl.BlockSpec((D, H1), lambda i: (0, 0)),            # W1: VMEM-resident bf16
            pl.BlockSpec((1, H1), lambda i: (0, 0)),            # b1: VMEM-resident
            pl.BlockSpec((1, H1), lambda i: (0, 0)),            # W23: VMEM-resident, lane-dense
            pl.BlockSpec(memory_space=pltpu.MemorySpace.SMEM),  # b23: SMEM scalar
        ],
        out_specs=pl.BlockSpec((TB, 1), lambda i: (i, 0)),
        compiler_params=pltpu.CompilerParams(
            dimension_semantics=("parallel",),
        ),
    )(x, w1t, b1r, w23, b23)

    return out[:B]


def xavier_normal(key, out_dim, in_dim):
    std = (2.0 / (in_dim + out_dim)) ** 0.5
    return std * jax.random.normal(key, (out_dim, in_dim), dtype=jnp.float32)


if __name__ == "__main__":
    # Small shapes consistent with the module: Learner(input_dim=256).
    # B=48 exercises a multi-step batch grid (TB=16 divides B -> no pad copy).
    B, D = 48, 256
    key = jax.random.PRNGKey(0)
    kx, k1, k2, k3, kb1, kb2, kb3 = jax.random.split(key, 7)

    x = jax.random.normal(kx, (B, D), dtype=jnp.float32)

    # Deterministic parameter init (xavier_normal weights, small uniform biases),
    # matching the layer shapes of Learner.__init__.
    w1 = xavier_normal(k1, 512, D)
    b1 = jax.random.uniform(kb1, (512,), jnp.float32, -0.01, 0.01)
    w2 = xavier_normal(k2, 32, 512)
    b2 = jax.random.uniform(kb2, (32,), jnp.float32, -0.01, 0.01)
    w3 = xavier_normal(k3, 1, 32)
    b3 = jax.random.uniform(kb3, (1,), jnp.float32, -0.01, 0.01)

    out = learner_forward(x, w1, b1, w2, b2, w3, b3)
    out = jax.block_until_ready(out)

    # Pure-f32 eval-mode reference of the module forward() (dropout == identity).
    h = jnp.maximum(x @ w1.T + b1, 0.0)
    h = h @ w2.T + b2
    ref = jax.nn.sigmoid(h @ w3.T + b3)

    assert out.shape == (B, 1)
    # bf16 cast on the first matmul inputs -> loosened tolerance vs f32 reference
    assert jnp.allclose(out, ref, atol=5e-3, rtol=5e-3), float(
        jnp.max(jnp.abs(out - ref)))

    print("KERNEL_OK")
</pallas_src>

<mosaic_0001>
module attributes {stable_mosaic.version = 11 : i64} {
  func.func @learner_kernel(%arg0: i32, %arg1: memref<16x256xf32, #tpu.memory_space<vmem>>, %arg2: memref<256x512xbf16, #tpu.memory_space<vmem>>, %arg3: memref<1x512xf32, #tpu.memory_space<vmem>>, %arg4: memref<1x512xf32, #tpu.memory_space<vmem>>, %arg5: memref<1xf32, #tpu.memory_space<smem>>, %arg6: memref<16x1xf32, #tpu.memory_space<vmem>>) attributes {dimension_semantics = [#tpu.dimension_semantics<parallel>], iteration_bounds = array<i64: 3>, scalar_prefetch = 0 : i64, scratch_operands = 0 : i64, tpu.core_type = #tpu.core_type<tc>, window_params = [{transform_indices = @transform_0, window_bounds = array<i64: 16, 256>}, {pipeline_mode = #tpu.pipeline_mode<synchronous>, transform_indices = @transform_1, window_bounds = array<i64: 256, 512>}, {pipeline_mode = #tpu.pipeline_mode<synchronous>, transform_indices = @transform_2, window_bounds = array<i64: 1, 512>}, {pipeline_mode = #tpu.pipeline_mode<synchronous>, transform_indices = @transform_3, window_bounds = array<i64: 1, 512>}, {transform_indices = @transform_4, window_bounds = array<i64: 1>}, {transform_indices = @transform_5, window_bounds = array<i64: 16, 1>}]} {
    %c0 = arith.constant 0 : index
    %c0_0 = arith.constant 0 : index
    %0 = vector.load %arg1[%c0, %c0_0] : memref<16x256xf32, #tpu.memory_space<vmem>>, vector<16x256xf32>
    %1 = arith.truncf %0 : vector<16x256xf32> to vector<16x256xbf16>
    %c0_1 = arith.constant 0 : index
    %c0_2 = arith.constant 0 : index
    %2 = vector.load %arg2[%c0_1, %c0_2] : memref<256x512xbf16, #tpu.memory_space<vmem>>, vector<256x512xbf16>
    %cst = arith.constant dense<0.000000e+00> : vector<16x512xf32>
    %3 = tpu.matmul %1, %2, %cst {dimension_numbers = #tpu.dot_dimension_numbers<[1], [0], [0], [1], [0, 0, 1, 1], [], []>} : vector<16x256xbf16>, vector<256x512xbf16>, vector<16x512xf32> -> vector<16x512xf32>
    %c0_3 = arith.constant 0 : index
    %c0_4 = arith.constant 0 : index
    %4 = vector.load %arg3[%c0_3, %c0_4] : memref<1x512xf32, #tpu.memory_space<vmem>>, vector<1x512xf32>
    %5 = vector.broadcast %4 : vector<1x512xf32> to vector<16x512xf32>
    %6 = arith.addf %3, %5 : vector<16x512xf32>
    %cst_5 = arith.constant 0.000000e+00 : f32
    %7 = vector.broadcast %cst_5 : f32 to vector<16x512xf32>
    %8 = arith.maximumf %6, %7 : vector<16x512xf32>
    %c0_6 = arith.constant 0 : index
    %c0_7 = arith.constant 0 : index
    %9 = vector.load %arg4[%c0_6, %c0_7] : memref<1x512xf32, #tpu.memory_space<vmem>>, vector<1x512xf32>
    %10 = vector.broadcast %9 : vector<1x512xf32> to vector<16x512xf32>
    %11 = arith.mulf %8, %10 : vector<16x512xf32>
    %cst_8 = arith.constant dense<0.000000e+00> : vector<16xf32>
    %12 = vector.multi_reduction <add>, %11, %cst_8 [1] : vector<16x512xf32> to vector<16xf32>
    %13 = vector.shape_cast %12 : vector<16xf32> to vector<16x1xf32>
    %c0_9 = arith.constant 0 : index
    %14 = memref.load %arg5[%c0_9] : memref<1xf32, #tpu.memory_space<smem>>
    %15 = vector.broadcast %14 : f32 to vector<16x1xf32>
    %16 = arith.addf %13, %15 : vector<16x1xf32>
    %17 = arith.negf %16 : vector<16x1xf32>
    %18 = math.exp %17 : vector<16x1xf32>
    %cst_10 = arith.constant 1.000000e+00 : f32
    %19 = vector.broadcast %cst_10 : f32 to vector<16x1xf32>
    %20 = arith.addf %19, %18 : vector<16x1xf32>
    %21 = arith.divf %19, %20 : vector<16x1xf32>
    %c0_11 = arith.constant 0 : index
    %c0_12 = arith.constant 0 : index
    %22 = vector.load %arg6[%c0_11, %c0_12] : memref<16x1xf32, #tpu.memory_space<vmem>>, vector<16x1xf32>
    tpu.vector_store %arg6[%c0_11, %c0_12], %21 {strides = array<i32>} : memref<16x1xf32, #tpu.memory_space<vmem>>, vector<16x1xf32>,
    return
  }
  func.func @transform_0(%arg0: i32) -> (i32, i32) {
    %c0_i32 = arith.constant 0 : i32
    %c0_i32_0 = arith.constant 0 : i32
    return %arg0, %c0_i32 : i32, i32
  }
  func.func @transform_1(%arg0: i32) -> (i32, i32) {
    %c0_i32 = arith.constant 0 : i32
    %c0_i32_0 = arith.constant 0 : i32
    %c0_i32_1 = arith.constant 0 : i32
    return %c0_i32, %c0_i32_0 : i32, i32
  }
  func.func @transform_2(%arg0: i32) -> (i32, i32) {
    %c0_i32 = arith.constant 0 : i32
    %c0_i32_0 = arith.constant 0 : i32
    %c0_i32_1 = arith.constant 0 : i32
    return %c0_i32, %c0_i32_0 : i32, i32
  }
  func.func @transform_3(%arg0: i32) -> (i32, i32) {
    %c0_i32 = arith.constant 0 : i32
    %c0_i32_0 = arith.constant 0 : i32
    %c0_i32_1 = arith.constant 0 : i32
    return %c0_i32, %c0_i32_0 : i32, i32
  }
  func.func @transform_4(%arg0: i32) -> i32 {
    %c0_i32 = arith.constant 0 : i32
    %c0_i32_0 = arith.constant 0 : i32
    return %c0_i32 : i32
  }
  func.func @transform_5(%arg0: i32) -> (i32, i32) {
    %c0_i32 = arith.constant 0 : i32
    %c0_i32_0 = arith.constant 0 : i32
    return %arg0, %c0_i32 : i32, i32
  }
}

</mosaic_0001>

<bundles_post_ra>
// kernel: tpu_custom_call.1
= control target key start
LH: loop header
LB: loop body
LE: loop exit
PB: predicated region body
PF: predicated region fallthrough
CT: control target
= control target key end

     0   :  { %s1678_s0 = inlined_call_operand.hbm [shape: f32[48,256], index: 0, kind: input, shape index: {}]   ;;  %s1679_s1 = inlined_call_operand.hbm [shape: bf16[256,512], index: 1, kind: input, shape index: {}]   ;;  %s1680_s2 = inlined_call_operand.hbm [shape: f32[1,512], index: 2, kind: input, shape index: {}]   ;;  %s1681_s3 = inlined_call_operand.vmem [shape: f32[1,512], index: 3, kind: input, shape index: {}]   ;;  %s1682_s4 = inlined_call_operand.<no memory space> [shape: f32[1], index: 4, kind: input, shape index: {}]   ;;  %s1683_s5 = inlined_call_operand.vmem [shape: f32[48,1], index: 5, kind: output, shape index: {}]  }
   0x1   :  { %10 = sst [smem:[#allocation2]] %s1682_s4 }
   0x2   :  { %11 = vsyncpa [#allocation4], 0 }
   0x3   :  { %13 = vsyncpa [#allocation4 + $0x1], 0 }
   0x4   :  { %14 = vsyncpa [#allocation6], 0  ;;  %s1540_s20 = smov 0   ;;  %s1542_s21 = smov 0  }
   0x5   :  { %s1544_s22 = smov 0   ;;  %s1546_s23 = smov 0  }
   0x6 LB: > { %s961_s4 = sadd.s32 4294967295, %s1501_s23   ;;  %p40_p0 = scmp.ne.s32.totalorder %s1493_s21, %s1489_s20  ;;  %s1501_s23 = sphi %s1546_s23, %s1691_s23   ;;  %s1497_s22 = sphi %s1544_s22, %s1690_s22   ;;  %s1493_s21 = sphi %s1542_s21, %s1689_s21   ;;  %s1489_s20 = sphi %s1540_s20, %s1688_s20  }
   0x7   : > { %p1562_p1 = scmp.eq.s32.totalorder %s961_s4, 0  ;;  %p963_p2 = scmp.ge.s32.totalorder %s1501_s23, 1 }
   0x8   : > { %p161_p3 = scmp.lt.s32.totalorder %s1501_s23, 4  ;;  %s172_s28 = sshll.u32 %s1679_s1, 4  ;;  %s173_s28 = int_to_ptr.hbm [resolvable:$true] %s172_s28 }
   0x9   : > { %p1570_p4 = por %p1562_p1, %p40_p0  ;;  %s1503_s30 = smov [#allocation5]  }
   0xa   : > { %p1577_p5 = pnand %p963_p2, %p161_p3  ;;  %s174_s6 = sshll.u32 %s1503_s30, 4  ;;  %s175_s6 = int_to_ptr.vmem [resolvable:$true] %s174_s6 }
   0xb   : > { %s187_s9 = sshll.u32 %s1680_s2, 4  ;;  %s1504_s10 = smov 256   ;;  %s188_s9 = int_to_ptr.hbm [resolvable:$true] %s187_s9 }
   0xc   : > { %p1313_p6 = pneg %p1577_p5  ;;  %s1505_s11 = smov 16  }
   0xd   : > { %s1506_s12 = smov [#allocation7]   ;;  %s1592_s14 = sadd.s32 1, %s1501_s23  }
   0xe   : > { %p1314_p7 = pnand %p1313_p6, %p1562_p1  ;;  %s189_s13 = sshll.u32 %s1506_s12, 4  ;;  %s190_s13 = int_to_ptr.vmem [resolvable:$true] %s189_s13 }
   0xf   : > { %s27_s15 = sadd.s32 1, %s1497_s22  ;;  %s24_s16 = ssub.s32 %s1501_s23, %s1592_s14 }
  0x10   : > { %1316 = dma.hbm_to_vmem [thread:$0]  (!%p1314_p7), %s173_s28, 8192, %s175_s6, [#allocation6], %s1504_s10, %s1504_s10, %s1505_s11  }
  0x11   : > { %1319 = dma.hbm_to_vmem [thread:$0]  (!%p1314_p7), %s188_s9, 64, %s190_s13, [#allocation6]  }
  0x12   : > { %p34_p8 = scmp.ne.s32.totalorder %s1497_s22, %s1493_s21  ;;  %p25_p9 = scmp.eq.s32.totalorder %s24_s16, 0 }
  0x13   : > { %p35_p10 = scmp.eq.s32.totalorder %s1501_s23, 0  ;;  %s206_s17 = sand.u32 1, %s1497_s22  }
  0x14   : > { %s1602_s18 = scalar_select %p25_p9, %s1497_s22, %s27_s15  }
  0x15   : > { %p36_p11 = por %p35_p10, %p34_p8  ;;  %p1326_p12 = scmp.lt.s32.totalorder %s1501_s23, 3 }
  0x16   : > { %s967_s19 = sshll.u32 %s206_s17, 5  ;;  %s1238_s20 = sshll.u32 %s1501_s23, 5 }
  0x17   : > { %s216_s28 = scalar_lea.hbm %s1678_s0, %s1238_s20  ;;  %s210_s6 = scalar_lea.vmem [#allocation3], %s967_s19 }
  0x18   : > { %s217_s30 = sshll.u32 %s216_s28, 4  ;;  %s219_s7 = sshll.u32 %s210_s6, 4  ;;  %s218_s30 = int_to_ptr.hbm [resolvable:$true] %s217_s30  ;;  %s220_s7 = int_to_ptr.vmem [resolvable:$true] %s219_s7 }
  0x19   : > { %p1609_p13 = pnand %p1326_p12, %p36_p11  ;;  %s207_s9 = scalar_lea.sflag [#allocation4], %s206_s17 }
  0x1a   : > { %s1433_s12 = sshra.s32 %s218_s30, 4  ;;  %s1440_s19 = scalar_lea.hbm %s1678_s0, 96  ;;  %s1434_s12 = int_to_ptr.hbm [resolvable:$true] %s1433_s12 }
  0x1b   : > { %s1435_s13 = scalar_lea.hbm %s1434_s12, 32  ;;  %p1437_p2 = pneg %p1609_p13 }
  0x1c   : > { %p1436_p0 = scmp.ne.s32.totalorder %s1434_s12, %s1435_s13  ;;  %p1441_p7 = scmp.lt.s32.totalorder %s1434_s12, %s1678_s0 }
  0x1d   : > { %p1442_p8 = scmp.lt.s32.totalorder %s1440_s19, %s1435_s13 }
  0x1e   : > { %p1438_p3 = pnand %p1437_p2, %p1436_p0 }
  0x1f   : > { %p1443_p9 = por %p1442_p8, %p1441_p7 }
  0x20   : > { %p1439_p6 = pneg %p1438_p3 }
  0x22   : > { %p1444_p10 = pnand %p1443_p9, %p1439_p6 }
  0x24   : > { %1447 = shalt.err (!%p1444_p10)
}
  0x25   : > { %1323 = dma.hbm_to_vmem [thread:$0]  (!%p1609_p13), %s218_s30, 512, %s220_s7, %s207_s9, %s1504_s10, %s1504_s10, %s1505_s11  }
  0x26   : > { %231 = sbr.rel (%p1577_p5) target bundleno = 411 (0x19b), region = 40  ;;  %s233_s17 = sand.u32 (!%p1577_p5), 1, %s1493_s21  }
  0x27   : > { %s972_s27 = sshll.u32 (!%p1577_p5), %s233_s17, 5  ;;  %s234_s28 = scalar_lea.sflag (!%p1577_p5), [#allocation4], %s233_s17 }
  0x28   : > { %s1629_s6 = scalar_lea.vmem (!%p1577_p5), [#allocation3], %s972_s27 }
  0x2b   : > { %1480 = dma.done.wait (%p1570_p4), %s234_s28, 512  }
  0x2c   : > { %1482 = vsyncadd (%p1570_p4), %s234_s28, 4294966784 }
  0x2d   : > { %1484 = dma.done.wait (%p1562_p1), [#allocation6], 8256  }
  0x2e   : > { %1486 = vsyncadd (%p1562_p1), [#allocation6], 4294959040  ;;  %v1091_v0 = vld [vmem:[#allocation5 + $0xe0] sm:$0xf]  ;;  %v1269_v1 = vld [vmem:[#allocation5 + $0xec] sm:$0xf0] }
  0x2f   : > { %v1219_v2 = vld [vmem:[#allocation5 + $0x1e0] sm:$0xf]  ;;  %v1092_v3 = vor.u32 %v1269_v1, %v1091_v0  ;;  %v1301_v4 = vld [vmem:[#allocation5 + $0x1ec] sm:$0xf0]  ;;  %v1267_v5 = vld [vmem:[#allocation5 + $0xe4] sm:$0xf] }
  0x30   : > { %v1093_v6 = vld [vmem:[#allocation5 + $0xf0] sm:$0xf0]  ;;  %v1220_v7 = vor.u32 %v1301_v4, %v1219_v2  ;;  %v1299_v9 = vld [vmem:[#allocation5 + $0x1e4] sm:$0xf]  ;;  %v1075_v11 = vld [vmem:[#allocation5 + $0xc0] sm:$0xf] }
  0x31   : > { %v1096_v8 = vor.u32 %v1267_v5, %v1093_v6  ;;  %v1221_v10 = vld [vmem:[#allocation5 + $0x1f0] sm:$0xf0]  ;;  %682 = vmatpush.bf16.msra.mxu0 %v1092_v3  ;;  %v1265_v13 = vld [vmem:[#allocation5 + $0xcc] sm:$0xf0]  ;;  %v1203_v14 = vld [vmem:[#allocation5 + $0x1c0] sm:$0xf] }
  0x32   : > { %v1224_v12 = vor.u32 %v1299_v9, %v1221_v10  ;;  %v1297_v15 = vld [vmem:[#allocation5 + $0x1cc] sm:$0xf0]  ;;  %696 = vmatpush.bf16.msra.mxu1 %v1220_v7  ;;  %v1076_v16 = vor.u32 %v1265_v13, %v1075_v11  ;;  %v1263_v18 = vld [vmem:[#allocation5 + $0xc4] sm:$0xf]  ;;  %v1077_v19 = vld [vmem:[#allocation5 + $0xd0] sm:$0xf0] }
  0x33   : > { %710 = vmatpush.bf16.msra.mxu2 %v1096_v8  ;;  %v1204_v17 = vor.u32 %v1297_v15, %v1203_v14  ;;  %v1295_v20 = vld [vmem:[#allocation5 + $0x1c4] sm:$0xf]  ;;  %v1080_v21 = vor.u32 %v1263_v18, %v1077_v19  ;;  %v1205_v22 = vld [vmem:[#allocation5 + $0x1d0] sm:$0xf0]  ;;  %v1059_v23 = vld [vmem:[#allocation5 + $0xa0] sm:$0xf] }
  0x34   : > { %724 = vmatpush.bf16.msra.mxu3 %v1224_v12  ;;  %v1261_v24 = vld [vmem:[#allocation5 + $0xac] sm:$0xf0]  ;;  %v1208_v25 = vor.u32 %v1295_v20, %v1205_v22  ;;  %v1187_v26 = vld [vmem:[#allocation5 + $0x1a0] sm:$0xf]  ;;  %v1259_v28 = vld [vmem:[#allocation5 + $0xa4] sm:$0xf] }
  0x35   : > { %v1293_v27 = vld [vmem:[#allocation5 + $0x1ac] sm:$0xf0]  ;;  %683 = vmatpush.bf16.msra.mxu0 %v1076_v16  ;;  %v1060_v29 = vor.u32 %v1261_v24, %v1059_v23  ;;  %v1061_v30 = vld [vmem:[#allocation5 + $0xb0] sm:$0xf0]  ;;  %v1291_v31 = vld [vmem:[#allocation5 + $0x1a4] sm:$0xf] }
  0x36   : > { %v1189_v32 = vld [vmem:[#allocation5 + $0x1b0] sm:$0xf0]  ;;  %697 = vmatpush.bf16.msra.mxu1 %v1204_v17  ;;  %v1188_v33 = vor.u32 %v1293_v27, %v1187_v26  ;;  %v1064_v34 = vor.u32 %v1259_v28, %v1061_v30  ;;  %v1043_v35 = vld [vmem:[#allocation5 + $0x80] sm:$0xf]  ;;  %v1257_v36 = vld [vmem:[#allocation5 + $0x8c] sm:$0xf0] }
  0x37   : > { %711 = vmatpush.bf16.msra.mxu2 %v1080_v21  ;;  %v1171_v37 = vld [vmem:[#allocation5 + $0x180] sm:$0xf]  ;;  %v1192_v38 = vor.u32 %v1291_v31, %v1189_v32  ;;  %v1289_v39 = vld [vmem:[#allocation5 + $0x18c] sm:$0xf0]  ;;  %v1255_v40 = vld [vmem:[#allocation5 + $0x84] sm:$0xf]  ;;  %v1044_v44 = vor.u32 %v1257_v36, %v1043_v35 }
  0x38   : > { %725 = vmatpush.bf16.msra.mxu3 %v1208_v25  ;;  %v1045_v41 = vld [vmem:[#allocation5 + $0x90] sm:$0xf0]  ;;  %v1287_v42 = vld [vmem:[#allocation5 + $0x184] sm:$0xf]  ;;  %v1172_v45 = vor.u32 %v1289_v39, %v1171_v37  ;;  %v1027_v47 = vld [vmem:[#allocation5 + $0x60] sm:$0xf] }
  0x39   : > { %v1173_v43 = vld [vmem:[#allocation5 + $0x190] sm:$0xf0]  ;;  %684 = vmatpush.bf16.msra.mxu0 %v1060_v29  ;;  %v1048_v46 = vor.u32 %v1255_v40, %v1045_v41  ;;  %v1253_v48 = vld [vmem:[#allocation5 + $0x6c] sm:$0xf0]  ;;  %v1155_v49 = vld [vmem:[#allocation5 + $0x160] sm:$0xf] }
  0x3a   : > { %698 = vmatpush.bf16.msra.mxu1 %v1188_v33  ;;  %v1176_v50 = vor.u32 %v1287_v42, %v1173_v43  ;;  %v1285_v51 = vld [vmem:[#allocation5 + $0x16c] sm:$0xf0]  ;;  %v1251_v52 = vld [vmem:[#allocation5 + $0x64] sm:$0xf]  ;;  %v1029_v53 = vld [vmem:[#allocation5 + $0x70] sm:$0xf0]  ;;  %v1028_v56 = vor.u32 %v1253_v48, %v1027_v47 }
  0x3b   : > { %712 = vmatpush.bf16.msra.mxu2 %v1064_v34  ;;  %v1283_v54 = vld [vmem:[#allocation5 + $0x164] sm:$0xf]  ;;  %v1157_v55 = vld [vmem:[#allocation5 + $0x170] sm:$0xf0]  ;;  %v1156_v57 = vor.u32 %v1285_v51, %v1155_v49  ;;  %v1032_v58 = vor.u32 %v1251_v52, %v1029_v53  ;;  %v1011_v59 = vld [vmem:[#allocation5 + $0x40] sm:$0xf] }
  0x3c   : > { %726 = vmatpush.bf16.msra.mxu3 %v1192_v38  ;;  %v1249_v60 = vld [vmem:[#allocation5 + $0x4c] sm:$0xf0]  ;;  %v1139_v61 = vld [vmem:[#allocation5 + $0x140] sm:$0xf]  ;;  %v1160_v62 = vor.u32 %v1283_v54, %v1157_v55  ;;  %v1247_v0 = vld [vmem:[#allocation5 + $0x44] sm:$0xf] }
  0x3d   : > { %685 = vmatpush.bf16.msra.mxu0 %v1044_v44  ;;  %v1281_v63 = vld [vmem:[#allocation5 + $0x14c] sm:$0xf0]  ;;  %v1013_v1 = vld [vmem:[#allocation5 + $0x50] sm:$0xf0]  ;;  %v1279_v2 = vld [vmem:[#allocation5 + $0x144] sm:$0xf]  ;;  %v1012_v4 = vor.u32 %v1249_v60, %v1011_v59 }
  0x3e   : > { %699 = vmatpush.bf16.msra.mxu1 %v1172_v45  ;;  %v1141_v3 = vld [vmem:[#allocation5 + $0x150] sm:$0xf0]  ;;  %v1140_v5 = vor.u32 %v1281_v63, %v1139_v61  ;;  %v1016_v6 = vor.u32 %v1247_v0, %v1013_v1  ;;  %v995_v7 = vld [vmem:[#allocation5 + $0x20] sm:$0xf]  ;;  %v1245_v8 = vld [vmem:[#allocation5 + $0x2c] sm:$0xf0] }
  0x3f   : > { %713 = vmatpush.bf16.msra.mxu2 %v1048_v46  ;;  %v1123_v9 = vld [vmem:[#allocation5 + $0x120] sm:$0xf]  ;;  %v1144_v10 = vor.u32 %v1279_v2, %v1141_v3  ;;  %v1277_v11 = vld [vmem:[#allocation5 + $0x12c] sm:$0xf0]  ;;  %v1243_v12 = vld [vmem:[#allocation5 + $0x24] sm:$0xf]  ;;  %v996_v16 = vor.u32 %v1245_v8, %v995_v7 }
  0x40   : > { %727 = vmatpush.bf16.msra.mxu3 %v1176_v50  ;;  %v997_v13 = vld [vmem:[#allocation5 + $0x30] sm:$0xf0]  ;;  %v1275_v14 = vld [vmem:[#allocation5 + $0x124] sm:$0xf]  ;;  %v979_v17 = vld [vmem:[#allocation5] sm:$0xf]  ;;  %v1124_v20 = vor.u32 %v1277_v11, %v1123_v9 }
  0x41   : > { %686 = vmatpush.bf16.msra.mxu0 %v1028_v56  ;;  %v1125_v15 = vld [vmem:[#allocation5 + $0x130] sm:$0xf0]  ;;  %v1241_v18 = vld [vmem:[#allocation5 + $0xc] sm:$0xf0]  ;;  %v1107_v19 = vld [vmem:[#allocation5 + $0x100] sm:$0xf]  ;;  %v1000_v21 = vor.u32 %v1243_v12, %v997_v13 }
  0x42   : > { %700 = vmatpush.bf16.msra.mxu1 %v1156_v57  ;;  %v1273_v22 = vld [vmem:[#allocation5 + $0x10c] sm:$0xf0]  ;;  %v1239_v23 = vld [vmem:[#allocation5 + $0x4] sm:$0xf]  ;;  %v981_v24 = vld [vmem:[#allocation5 + $0x10] sm:$0xf0]  ;;  %v1128_v25 = vor.u32 %v1275_v14, %v1125_v15  ;;  %v980_v32 = vor.u32 %v1241_v18, %v979_v17 }
  0x43   : > { %714 = vmatpush.bf16.msra.mxu2 %v1032_v58  ;;  %v1271_v26 = vld [vmem:[#allocation5 + $0x104] sm:$0xf]  ;;  %v1109_v27 = vld [vmem:[#allocation5 + $0x110] sm:$0xf0]  ;;  %v1099_v28 = vld [vmem:[#allocation5 + $0xe8] sm:$0xf]  ;;  %v1108_v36 = vor.u32 %v1273_v22, %v1107_v19  ;;  %v984_v37 = vor.u32 %v1239_v23, %v981_v24 }
  0x44   : > { %728 = vmatpush.bf16.msra.mxu3 %v1160_v62  ;;  %v1270_v29 = vld [vmem:[#allocation5 + $0xf4] sm:$0xf0]  ;;  %v1227_v30 = vld [vmem:[#allocation5 + $0x1e8] sm:$0xf]  ;;  %v1268_v33 = vld [vmem:[#allocation5 + $0xec] sm:$0xf]  ;;  %v1112_v41 = vor.u32 %v1271_v26, %v1109_v27 }
  0x45   : > { %687 = vmatpush.bf16.msra.mxu0 %v1012_v4  ;;  %v1302_v31 = vld [vmem:[#allocation5 + $0x1f4] sm:$0xf0]  ;;  %v1101_v34 = vld [vmem:[#allocation5 + $0xf8] sm:$0xf0]  ;;  %v1300_v35 = vld [vmem:[#allocation5 + $0x1ec] sm:$0xf]  ;;  %v1100_v42 = vor.u32 %v1270_v29, %v1099_v28 }
  0x46   : > { %701 = vmatpush.bf16.msra.mxu1 %v1140_v5  ;;  %v1229_v38 = vld [vmem:[#allocation5 + $0x1f8] sm:$0xf0]  ;;  %v282_v39 = vld [vmem:[%s1629_s6] sm:$0xff]  ;;  %v284_v40 = vld [vmem:[%s1629_s6 + $0x10] sm:$0xff]  ;;  %v1228_v45 = vor.u32 %v1302_v31, %v1227_v30  ;;  %v1104_v46 = vor.u32 %v1268_v33, %v1101_v34  ;;  %s830_s29 = sld [smem:[#allocation2]]  ;;  %s975_s10 = sshll.u32 %s961_s4, 1 }
  0x47   : > { %715 = vmatpush.bf16.msra.mxu2 %v1016_v6  ;;  %v283_v43 = vld [vmem:[%s1629_s6 + $0x8] sm:$0xff]  ;;  %v285_v44 = vld [vmem:[%s1629_s6 + $0x18] sm:$0xff]  ;;  %v1232_v50 = vor.u32 %v1300_v35, %v1229_v38  ;;  %v1643_v54 = vpack.c.bf16 %v284_v40, %v282_v39  ;;  %p277_p1 = scmp.lt.s32.totalorder %s975_s10, 5  ;;  %vm872_vm2 = vcmask 7168  }
  0x48   : > { %729 = vmatpush.bf16.msra.mxu3 %v1144_v10  ;;  %v1083_v47 = vld [vmem:[#allocation5 + $0xc8] sm:$0xf]  ;;  %v1266_v48 = vld [vmem:[#allocation5 + $0xd4] sm:$0xf0]  ;;  %v1264_v52 = vld [vmem:[#allocation5 + $0xcc] sm:$0xf]  ;;  %v1645_v57 = vpack.c.bf16 %v285_v44, %v283_v43 }
  0x49   : > { %688 = vmatpush.bf16.msra.mxu0 %v996_v16  ;;  %v1211_v49 = vld [vmem:[#allocation5 + $0x1c8] sm:$0xf]  ;;  %v1298_v51 = vld [vmem:[#allocation5 + $0x1d4] sm:$0xf0]  ;;  %v1085_v53 = vld [vmem:[#allocation5 + $0xd8] sm:$0xf0]  ;;  %v1084_v58 = vor.u32 %v1266_v48, %v1083_v47 }
  0x4a   : > { %702 = vmatpush.bf16.msra.mxu1 %v1124_v20  ;;  %v1296_v55 = vld [vmem:[#allocation5 + $0x1cc] sm:$0xf]  ;;  %v1213_v56 = vld [vmem:[#allocation5 + $0x1d8] sm:$0xf0]  ;;  %v1212_v59 = vor.u32 %v1298_v51, %v1211_v49  ;;  %v1088_v60 = vor.u32 %v1264_v52, %v1085_v53  ;;  %v1067_v61 = vld [vmem:[#allocation5 + $0xa8] sm:$0xf] }
  0x4b   : > { %716 = vmatpush.bf16.msra.mxu2 %v1000_v21  ;;  %v1262_v62 = vld [vmem:[#allocation5 + $0xb4] sm:$0xf0]  ;;  %v1195_v63 = vld [vmem:[#allocation5 + $0x1a8] sm:$0xf]  ;;  %v1216_v0 = vor.u32 %v1296_v55, %v1213_v56  ;;  %v1260_v2 = vld [vmem:[#allocation5 + $0xac] sm:$0xf] }
  0x4c   : > { %730 = vmatpush.bf16.msra.mxu3 %v1128_v25  ;;  %v1294_v1 = vld [vmem:[#allocation5 + $0x1b4] sm:$0xf0]  ;;  %v1069_v3 = vld [vmem:[#allocation5 + $0xb8] sm:$0xf0]  ;;  %v1292_v4 = vld [vmem:[#allocation5 + $0x1ac] sm:$0xf]  ;;  %v1068_v6 = vor.u32 %v1262_v62, %v1067_v61 }
  0x4d   : > { %689 = vmatpush.bf16.msra.mxu0 %v980_v32  ;;  %v1197_v5 = vld [vmem:[#allocation5 + $0x1b8] sm:$0xf0]  ;;  %v1196_v7 = vor.u32 %v1294_v1, %v1195_v63  ;;  %v1072_v8 = vor.u32 %v1260_v2, %v1069_v3  ;;  %v1051_v9 = vld [vmem:[#allocation5 + $0x88] sm:$0xf]  ;;  %v1258_v10 = vld [vmem:[#allocation5 + $0x94] sm:$0xf0] }
  0x4e   : > { %703 = vmatpush.bf16.msra.mxu1 %v1108_v36  ;;  %v1179_v11 = vld [vmem:[#allocation5 + $0x188] sm:$0xf]  ;;  %v1200_v12 = vor.u32 %v1292_v4, %v1197_v5  ;;  %v1290_v13 = vld [vmem:[#allocation5 + $0x194] sm:$0xf0]  ;;  %v1256_v14 = vld [vmem:[#allocation5 + $0x8c] sm:$0xf]  ;;  %v1052_v18 = vor.u32 %v1258_v10, %v1051_v9 }
  0x4f   : > { %717 = vmatpush.bf16.msra.mxu2 %v984_v37  ;;  %v1053_v15 = vld [vmem:[#allocation5 + $0x98] sm:$0xf0]  ;;  %v1288_v16 = vld [vmem:[#allocation5 + $0x18c] sm:$0xf]  ;;  %v1180_v19 = vor.u32 %v1290_v13, %v1179_v11  ;;  %v1035_v21 = vld [vmem:[#allocation5 + $0x68] sm:$0xf] }
  0x50   : > { %731 = vmatpush.bf16.msra.mxu3 %v1112_v41  ;;  %690 = vmatmul.bf16.vlgmr.msra.gmra.mxu0 %v1643_v54  ;;  %v1181_v17 = vld [vmem:[#allocation5 + $0x198] sm:$0xf0]  ;;  %v1056_v20 = vor.u32 %v1256_v14, %v1053_v15  ;;  %v1254_v22 = vld [vmem:[#allocation5 + $0x74] sm:$0xf0]  ;;  %v1163_v23 = vld [vmem:[#allocation5 + $0x168] sm:$0xf] }
  0x51   : > { %738 = vmatpush.bf16.msrb.mxu0 %v1100_v42  ;;  %704 = vmatmul.bf16.vlgmr.msra.gmra.mxu1 %v1645_v57  ;;  %v1184_v24 = vor.u32 %v1288_v16, %v1181_v17  ;;  %v1286_v25 = vld [vmem:[#allocation5 + $0x174] sm:$0xf0]  ;;  %v1252_v26 = vld [vmem:[#allocation5 + $0x6c] sm:$0xf]  ;;  %v1037_v27 = vld [vmem:[#allocation5 + $0x78] sm:$0xf0]  ;;  %v1036_v30 = vor.u32 %v1254_v22, %v1035_v21 }
  0x52   : > { %752 = vmatpush.bf16.msrb.mxu1 %v1228_v45  ;;  %718 = vmatmul.bf16.vlgmr.msra.gmra.mxu2 %v1643_v54  ;;  %v1284_v28 = vld [vmem:[#allocation5 + $0x16c] sm:$0xf]  ;;  %v1165_v29 = vld [vmem:[#allocation5 + $0x178] sm:$0xf0]  ;;  %v1164_v31 = vor.u32 %v1286_v25, %v1163_v23  ;;  %v1040_v32 = vor.u32 %v1252_v26, %v1037_v27  ;;  %v1019_v33 = vld [vmem:[#allocation5 + $0x48] sm:$0xf] }
  0x53   : > { %766 = vmatpush.bf16.msrb.mxu2 %v1104_v46  ;;  %732 = vmatmul.bf16.vlgmr.msra.gmra.mxu3 %v1645_v57  ;;  %v1250_v34 = vld [vmem:[#allocation5 + $0x54] sm:$0xf0]  ;;  %v1147_v35 = vld [vmem:[#allocation5 + $0x148] sm:$0xf]  ;;  %v1168_v36 = vor.u32 %v1284_v28, %v1165_v29  ;;  %v1248_v38 = vld [vmem:[#allocation5 + $0x4c] sm:$0xf] }
  0x54   : > { %780 = vmatpush.bf16.msrb.mxu3 %v1232_v50  ;;  %v1282_v37 = vld [vmem:[#allocation5 + $0x154] sm:$0xf0]  ;;  %v1021_v39 = vld [vmem:[#allocation5 + $0x58] sm:$0xf0]  ;;  %v1280_v40 = vld [vmem:[#allocation5 + $0x14c] sm:$0xf]  ;;  %v1020_v42 = vor.u32 %v1250_v34, %v1019_v33 }
  0x55   : > { %739 = vmatpush.bf16.msrb.mxu0 %v1084_v58  ;;  %v1149_v41 = vld [vmem:[#allocation5 + $0x158] sm:$0xf0]  ;;  %v1148_v43 = vor.u32 %v1282_v37, %v1147_v35  ;;  %v1024_v44 = vor.u32 %v1248_v38, %v1021_v39  ;;  %v1003_v45 = vld [vmem:[#allocation5 + $0x28] sm:$0xf]  ;;  %v1246_v46 = vld [vmem:[#allocation5 + $0x34] sm:$0xf0] }
  0x56   : > { %753 = vmatpush.bf16.msrb.mxu1 %v1212_v59  ;;  %v1131_v47 = vld [vmem:[#allocation5 + $0x128] sm:$0xf]  ;;  %v1152_v48 = vor.u32 %v1280_v40, %v1149_v41  ;;  %v1278_v49 = vld [vmem:[#allocation5 + $0x134] sm:$0xf0]  ;;  %v1244_v50 = vld [vmem:[#allocation5 + $0x2c] sm:$0xf]  ;;  %v1004_v55 = vor.u32 %v1246_v46, %v1003_v45 }
  0x57   : > { %767 = vmatpush.bf16.msrb.mxu2 %v1088_v60  ;;  %v1005_v51 = vld [vmem:[#allocation5 + $0x38] sm:$0xf0]  ;;  %v1276_v52 = vld [vmem:[#allocation5 + $0x12c] sm:$0xf]  ;;  %v1132_v56 = vor.u32 %v1278_v49, %v1131_v47  ;;  %v987_v59 = vld [vmem:[#allocation5 + $0x8] sm:$0xf] }
  0x58   : > { %781 = vmatpush.bf16.msrb.mxu3 %v1216_v0  ;;  %v1133_v53 = vld [vmem:[#allocation5 + $0x138] sm:$0xf0]  ;;  %v1008_v58 = vor.u32 %v1244_v50, %v1005_v51  ;;  %v1242_v60 = vld [vmem:[#allocation5 + $0x14] sm:$0xf0]  ;;  %v1115_v61 = vld [vmem:[#allocation5 + $0x108] sm:$0xf] }
  0x59   : > { %740 = vmatpush.bf16.msrb.mxu0 %v1068_v6  ;;  %v1136_v62 = vor.u32 %v1276_v52, %v1133_v53  ;;  %v1274_v63 = vld [vmem:[#allocation5 + $0x114] sm:$0xf0]  ;;  %v1240_v0 = vld [vmem:[#allocation5 + $0xc] sm:$0xf]  ;;  %v989_v1 = vld [vmem:[#allocation5 + $0x18] sm:$0xf0]  ;;  %v988_v4 = vor.u32 %v1242_v60, %v987_v59 }
  0x5a   : > { %754 = vmatpush.bf16.msrb.mxu1 %v1196_v7  ;;  %v1272_v2 = vld [vmem:[#allocation5 + $0x10c] sm:$0xf]  ;;  %v1117_v3 = vld [vmem:[#allocation5 + $0x118] sm:$0xf0]  ;;  %v1116_v5 = vor.u32 %v1274_v63, %v1115_v61  ;;  %v992_v6 = vor.u32 %v1240_v0, %v989_v1  ;;  %v352_v10 = vld [vmem:[#allocation7] sm:$0xf] }
  0x5b   : > { %768 = vmatpush.bf16.msrb.mxu2 %v1072_v8  ;;  %v1120_v7 = vor.u32 %v1272_v2, %v1117_v3  ;;  %v354_v13 = vperm.slane %v352_v10, 0  ;;  %v355_v14 = vperm.slane %v352_v10, 1  ;;  %v357_v33 = vperm.slane %v352_v10, 3  ;;  %s1693_s10 = smov (!%p277_p1, %s975_s10), 5 }
  0x5c   : > { %782 = vmatpush.bf16.msrb.mxu3 %v1200_v12  ;;  %s976_s11 = sshll.u32 %s1693_s10, 3 }
  0x5d   : > { %741 = vmatpush.bf16.msrb.mxu0 %v1052_v18  ;;  %s280_s4 = scalar_lea.vmem %s1683_s5, %s976_s11 }
  0x5e   : > { %755 = vmatpush.bf16.msrb.mxu1 %v1180_v19  ;;  %v356_v19 = vperm.slane %v352_v10, 2 }
  0x5f   : > { %769 = vmatpush.bf16.msrb.mxu2 %v1056_v20 }
  0x60   : > { %783 = vmatpush.bf16.msrb.mxu3 %v1184_v24 }
  0x61   : > { %742 = vmatpush.bf16.msrb.mxu0 %v1036_v30 }
  0x62   : > { %756 = vmatpush.bf16.msrb.mxu1 %v1164_v31 }
  0x63   : > { %770 = vmatpush.bf16.msrb.mxu2 %v1040_v32 }
  0x64   : > { %784 = vmatpush.bf16.msrb.mxu3 %v1168_v36 }
  0x65   : > { %743 = vmatpush.bf16.msrb.mxu0 %v1020_v42 }
  0x66   : > { %757 = vmatpush.bf16.msrb.mxu1 %v1148_v43 }
  0x67   : > { %771 = vmatpush.bf16.msrb.mxu2 %v1024_v44 }
  0x68   : > { %785 = vmatpush.bf16.msrb.mxu3 %v1152_v48 }
  0x69   : > { %744 = vmatpush.bf16.msrb.mxu0 %v1004_v55 }
  0x6a   : > { %758 = vmatpush.bf16.msrb.mxu1 %v1132_v56 }
  0x6b   : > { %772 = vmatpush.bf16.msrb.mxu2 %v1008_v58 }
  0x6c   : > { %786 = vmatpush.bf16.msrb.mxu3 %v1136_v62 }
  0x6d   : > { %745 = vmatpush.bf16.msrb.mxu0 %v988_v4 }
  0x6e   : > { %759 = vmatpush.bf16.msrb.mxu1 %v1116_v5 }
  0x6f   : > { %773 = vmatpush.bf16.msrb.mxu2 %v992_v6 }
  0x70   : > { %787 = vmatpush.bf16.msrb.mxu3 %v1120_v7  ;;  %746 = vmatmul.bf16.vlgmr.msrb.gmra.mxu0 %v1643_v54 }
  0x71   : > { %760 = vmatmul.bf16.vlgmr.msrb.gmra.mxu1 %v1645_v57 }
  0x72   : > { %774 = vmatmul.bf16.vlgmr.msrb.gmra.mxu2 %v1643_v54  ;;  %v802_v54 = vld [vmem:[%s1681_s3] sm:$0xf] }
  0x73   : > { %788 = vmatmul.bf16.vlgmr.msrb.gmra.mxu3 %v1645_v57  ;;  %v804_v27 = vperm.slane %v802_v54, 0  ;;  %v805_v28 = vperm.slane %v802_v54, 1  ;;  %v806_v35 = vperm.slane %v802_v54, 2  ;;  %v807_v48 = vperm.slane %v802_v54, 3 }
  0xcd   : > { %v691_v8 = vpop.f32.mrf.mxu0 }
  0xce   : > { %v705_v9 = vpop.f32.mrf.mxu1  ;;  %v692_v17 = vadd.f32 %v691_v8, %v354_v13  ;;  %v831_v8 = vstv %s830_s29 }
  0xd0   : > { %v706_v20 = vadd.f32 %v705_v9, %v692_v17 }
  0xd2   : > { %v794_v26 = vmax.f32 %v706_v20, 0.0 }
  0xd4   : > { %v812_v36 = vmul.f32 %v804_v27, %v794_v26 }
  0xd5   : > { %v719_v11 = vpop.f32.mrf.mxu2  ;;  %v693_v15 = vpop.f32.mrf.mxu0 }
  0xd6   : > { %v733_v12 = vpop.f32.mrf.mxu3  ;;  %v707_v16 = vpop.f32.mrf.mxu1  ;;  %v720_v18 = vadd.f32 %v719_v11, %v355_v14  ;;  %v694_v31 = vadd.f32 %v693_v15, %v354_v13 }
  0xd8   : > { %v734_v22 = vadd.f32 %v733_v12, %v720_v18  ;;  %v708_v39 = vadd.f32 %v707_v16, %v694_v31 }
  0xda   : > { %v795_v30 = vmax.f32 %v734_v22, 0.0  ;;  %v798_v50 = vmax.f32 %v708_v39, 0.0 }
  0xdc   : > { %v813_v38 = vmul.f32 %v805_v28, %v795_v30  ;;  %v816_v60 = vmul.f32 %v804_v27, %v798_v50 }
  0xdd   : > { %v721_v21 = vpop.f32.mrf.mxu2 }
  0xde   : > { %v735_v57 = vpop.f32.mrf.mxu3  ;;  %v722_v32 = vadd.f32 %v721_v21, %v355_v14  ;;  %v820_v53 = vadd.f32 %v813_v38, %v812_v36 }
  0xe0   : > { %v736_v40 = vadd.f32 %v735_v57, %v722_v32 }
  0xe2   : > { %v799_v51 = vmax.f32 %v736_v40, 0.0 }
  0xe4   : > { %v817_v61 = vmul.f32 %v805_v28, %v799_v51 }
  0xe6   : > { %v825_v3 = vadd.f32 %v817_v61, %v816_v60 }
  0xed   : > { %v747_v23 = vpop.f32.mrf.mxu0 }
  0xee   : > { %v748_v24 = vadd.f32 %v747_v23, %v356_v19  ;;  %v761_v25 = vpop.f32.mrf.mxu1 }
  0xf0   : > { %v762_v29 = vadd.f32 %v761_v25, %v748_v24 }
  0xf2   : > { %v796_v34 = vmax.f32 %v762_v29, 0.0 }
  0xf4   : > { %v814_v45 = vmul.f32 %v806_v35, %v796_v34 }
  0xf5   : > { %v775_v37 = vpop.f32.mrf.mxu2  ;;  %v749_v43 = vpop.f32.mrf.mxu0 }
  0xf6   : > { %v776_v41 = vadd.f32 %v775_v37, %v357_v33  ;;  %v789_v42 = vpop.f32.mrf.mxu3  ;;  %v750_v44 = vadd.f32 %v749_v43, %v356_v19  ;;  %v763_v47 = vpop.f32.mrf.mxu1  ;;  %v821_v58 = vadd.f32 %v820_v53, %v814_v45 }
  0xf8   : > { %v790_v46 = vadd.f32 %v789_v42, %v776_v41  ;;  %v764_v49 = vadd.f32 %v763_v47, %v750_v44 }
  0xfa   : > { %v797_v52 = vmax.f32 %v790_v46, 0.0  ;;  %v800_v55 = vmax.f32 %v764_v49, 0.0 }
  0xfc   : > { %v815_v56 = vmul.f32 %v807_v48, %v797_v52  ;;  %v818_v1 = vmul.f32 %v806_v35, %v800_v55 }
  0xfd   : > { %v777_v59 = vpop.f32.mrf.mxu2 }
  0xfe   : > { %v778_v62 = vadd.f32 %v777_v59, %v357_v33  ;;  %v822_v63 = vadd.f32 %v821_v58, %v815_v56  ;;  %v791_v0 = vpop.f32.mrf.mxu3  ;;  %v826_v6 = vadd.f32 %v825_v3, %v818_v1 }
 0x100   : > { %v792_v2 = vadd.f32 %v791_v0, %v778_v62  ;;  %823 = vadd.xlane.f32.xlu0 %v822_v63 }
 0x102   : > { %v801_v4 = vmax.f32 %v792_v2, 0.0 }
 0x104   : > { %v819_v5 = vmul.f32 %v807_v48, %v801_v4 }
 0x106   : > { %v827_v7 = vadd.f32 %v826_v6, %v819_v5 }
 0x108   : > { %828 = vadd.xlane.f32.xlu0 %v827_v7 }
 0x173   : > { %v824_v9 = vpop.xlane.xlu0 %823 }
 0x174   : > { %v832_v10 = vadd.f32 %v831_v8, %v824_v9 }
 0x176   : > { %v1233_v11 = vmul.f32 -1.442695, %v832_v10 }
 0x178   : > { %1365 = vpow2.f32 %v1233_v11 }
 0x17b   : > { %v829_v12 = vpop.xlane.xlu0 %828 }
 0x17c   : > { %v833_v13 = vadd.f32 %v831_v8, %v829_v12 }
 0x17e   : > { %v1366_v14 = vpop.eup %1365  ;;  %v1234_v15 = vmul.f32 -1.442695, %v833_v13 }
 0x17f   : > { %v840_v16 = vadd.f32 1.0, %v1366_v14 }
 0x180   : > { %1367 = vpow2.f32 %v1234_v15 }
 0x181   : > { %1369 = vrcp.f32 %v840_v16  ;;  %v853_v54 = vand.u32 2147483648, %v840_v16  ;;  %v851_v57 = vand.u32 2147483647, %v840_v16  ;;  %vm847_vm1 = vweird.f32 %v840_v16 }
 0x183   : > { %v854_v25 = vor.u32 1.1754944e-38, %v853_v54  ;;  %vm852_vm4 = vcmp.eq.f32.partialorder %v851_v57, 8.507059e+37 }
 0x186   : > { %v1368_v17 = vpop.eup %1367 }
 0x187   : > { %v1370_v18 = vpop.eup %1369  ;;  %v841_v19 = vadd.f32 1.0, %v1368_v17 }
 0x188   : > { %v843_v20 = vmul.f32 %v1370_v18, %v840_v16  ;;  %vm848_vm0 = vweird.f32 %v1370_v18 }
 0x189   : > { %1371 = vrcp.f32 %v841_v19  ;;  %vm849_vm3 = vmor %vm847_vm1, %vm848_vm0  ;;  %v868_v30 = vand.u32 2147483648, %v841_v19  ;;  %v866_v32 = vand.u32 2147483647, %v841_v19  ;;  %vm862_vm6 = vweird.f32 %v841_v19 }
 0x18a   : > { %v844_v21 = vsub.f32 1.0, %v843_v20 }
 0x18b   : > { %v869_v34 = vor.u32 1.1754944e-38, %v868_v30  ;;  %vm867_vm8 = vcmp.eq.f32.partialorder %v866_v32, 8.507059e+37 }
 0x18c   : > { %v845_v22 = vmul.f32 %v1370_v18, %v844_v21 }
 0x18e   : > { %v846_v23 = vadd.f32 %v1370_v18, %v845_v22 }
 0x18f   : > { %v1372_v24 = vpop.eup %1371 }
 0x190   : > { %v850_v26 = vsel %vm849_vm3, %v1370_v18, %v846_v23  ;;  %v858_v27 = vmul.f32 %v1372_v24, %v841_v19  ;;  %vm863_vm5 = vweird.f32 %v1372_v24 }
 0x191   : > { %v855_v28 = vsel %vm852_vm4, %v854_v25, %v850_v26  ;;  %vm864_vm7 = vmor %vm862_vm6, %vm863_vm5 }
 0x192   : > { %873 = vst.msk [vmem:[%s280_s4] sm:$0xff] %vm872_vm2, %v855_v28  ;;  %v859_v29 = vsub.f32 1.0, %v858_v27 }
 0x194   : > { %v860_v31 = vmul.f32 %v1372_v24, %v859_v29 }
 0x196   : > { %v861_v33 = vadd.f32 %v1372_v24, %v860_v31 }
 0x198   : > { %v865_v35 = vsel %vm864_vm7, %v1372_v24, %v861_v33 }
 0x199   : > { %v870_v36 = vsel %vm867_vm8, %v869_v34, %v865_v35 }
 0x19a   : > { %874 = vst.msk [vmem:[%s280_s4 + $0x8] sm:$0xff] %vm872_vm2, %v870_v36 }
 0x19b PF: > { %p17_p4 = scmp.ge.s32.totalorder %s1592_s14, 5   ;;  %s1688_s20 = smov %s1493_s21 }
 0x19c   : > { %s1689_s21 = smov %s1497_s22  ;;  %s1690_s22 = smov %s1602_s18 }
 0x19d   : > { %s1691_s23 = smov %s1592_s14  ;;  %19 = sbr.rel (!%p17_p4) target bundleno = 6 (0x6), region = 88 }
 0x1a2   :  { %897 = vsyncpa [#allocation4], 1 }
 0x1a3   :  { %899 = vsyncpa [#allocation4 + $0x1], 1 }
 0x1a4   :  { %900 = vsyncpa [#allocation6], 1 }

</bundles_post_ra>
